<compile_context>
chip_gen: v7x
topology: tpu7x:2x2x1
jax: 0.10.0
libtpu: 0.0.40
codegen_flags: <defaults>
</compile_context>

<pallas_src>
import jax
import jax.numpy as jnp
import numpy as np
from jax.experimental import pallas as pl
from jax.experimental.pallas import tpu as pltpu

LANE = 128          # TPU lane width: fused stream width and padded output width
SUBLANE_BF16 = 16   # bf16 sublane packing: batch tiles are multiples of this


# --------------------------------------------------------------------------- #
# Kernel
# --------------------------------------------------------------------------- #
def dueling_dqn_kernel(x_ref, w1_ref, w2_ref, w34_ref, b_ref, q_ref):
    """Fused trunk + [value|advantage] streams; dueling combine lives in w34/b.

    Operand layout (prepared by fuse_params):
      x   : (TB, input_size) f32 batch tile (cast to bf16 here, not in wrapper)
      w1  : (input_size, 256) bf16
      w2  : (256, 128)        bf16
      w34 : (128, 256) bf16 = [ w3 | w4 ]
            w3 = [wv1 | wa1]                   -> va hidden = [v1 | a1]
            w4 = folded dueling output layer:
                 rows 0:64   -> wv2 broadcast over columns 0:A
                 rows 64:128 -> wa2 - column_mean(wa2) in columns 0:A
                 columns A:128 are zero (lane padding)
      b   : (1, 640) f32 = [ b1(256) | b2(128) | b3(128) | b_q(128) ]
    """
    f32 = jnp.float32
    wdt = w1_ref.dtype

    b1 = b_ref[:, 0:256]
    b2 = b_ref[:, 256:384]
    b3 = b_ref[:, 384:512]
    b4 = b_ref[:, 512:640]

    w3 = w34_ref[:, 0:LANE]
    w4 = w34_ref[:, LANE:2 * LANE]

    # In-kernel cast: x stays f32 in HBM, the cast hides under the MXU.
    x = x_ref[...].astype(wdt)

    # Trunk: Linear -> ReLU -> Linear -> ReLU
    h1 = jnp.maximum(jnp.dot(x, w1_ref[...], preferred_element_type=f32) + b1, 0.0)
    h2 = jnp.maximum(
        jnp.dot(h1.astype(wdt), w2_ref[...], preferred_element_type=f32) + b2, 0.0)

    # Fused value/advantage hidden layer: one lane-dense 128-wide matmul.
    va = jnp.maximum(
        jnp.dot(h2.astype(wdt), w3, preferred_element_type=f32) + b3, 0.0)

    # Fused, dueling-folded output layer: cols 0:A = Q-values, cols A:128 = 0.
    q_ref[...] = (
        jnp.dot(va.astype(wdt), w4, preferred_element_type=f32) + b4
    ).astype(q_ref.dtype)


# --------------------------------------------------------------------------- #
# Parameter fusion / wrapper
# --------------------------------------------------------------------------- #
def fuse_params(params, num_actions, weight_dtype=jnp.bfloat16):
    """Pre-fuse the 12 PyTorch-style tensors into 4 kernel operands (done once).

    The dueling combine is folded into the output layer in f32 before casting.
    """
    A = num_actions
    assert A <= LANE, "fused output layer is padded to 128 lanes"
    # TODO(synk): num_actions > 128 needs a wider output pad (multiple of 128).

    f32 = jnp.float32
    w3 = jnp.concatenate([params["wv1"], params["wa1"]], axis=1)          # (128, 128)
    b3 = jnp.concatenate([params["bv1"], params["ba1"]], axis=1)          # (1, 128)

    # Fold Q = V + (A - mean(A)) into the weights, in f32.
    wa2_c = params["wa2"] - params["wa2"].mean(axis=1, keepdims=True)     # (64, A)
    ba2_c = params["ba2"] - params["ba2"].mean(axis=1, keepdims=True)     # (1, A)
    wv2_b = jnp.broadcast_to(params["wv2"], (64, A))                      # (64, A)

    w4 = jnp.zeros((LANE, LANE), f32)
    w4 = w4.at[0:64, 0:A].set(wv2_b)                                      # value head
    w4 = w4.at[64:128, 0:A].set(wa2_c)                                    # advantage head
    b4 = jnp.zeros((1, LANE), f32)
    b4 = b4.at[:, 0:A].set(ba2_c + params["bv2"])

    return {
        "num_actions": A,
        "w1": params["w1"].astype(weight_dtype),
        "w2": params["w2"].astype(weight_dtype),
        "w34": jnp.concatenate([w3, w4], axis=1).astype(weight_dtype),    # (128, 256)
        "b": jnp.concatenate([params["b1"], params["b2"], b3, b4],
                             axis=1).astype(f32),                         # (1, 640)
    }


def dueling_dqn_forward(x_flat, fused, *, tb_max=1024,
                        vmem_limit_bytes=32 * 1024 * 1024):
    """x_flat: (B, input_size) f32. Returns Q-values (B, num_actions) f32.

    tb_max=1024 keeps the double-buffered f32 x tile + intermediates well under
    v7x's 64 MiB VMEM for input_size ~ 1K; v5e/v6e (128 MiB) can raise it.
    """
    batch, in_size = x_flat.shape
    num_actions = fused["num_actions"]

    # Pad batch to a multiple of 16 (bf16 sublane packing), pick the batch tile,
    # then pad to a multiple of the tile so the grid divides evenly.
    b16 = max(SUBLANE_BF16, ((batch + SUBLANE_BF16 - 1) // SUBLANE_BF16) * SUBLANE_BF16)
    tb = min(tb_max, b16)
    b_pad = ((b16 + tb - 1) // tb) * tb

    x_p = x_flat.astype(jnp.float32)
    if b_pad != batch:
        x_p = jnp.pad(x_p, ((0, b_pad - batch), (0, 0)))

    grid = (b_pad // tb,)

    flops = 2 * b_pad * (in_size * 256 + 256 * 128 + 128 * 128 + 128 * 128)
    bytes_accessed = (
        x_p.size * 4
        + sum(fused[k].size * fused[k].dtype.itemsize for k in ("w1", "w2", "w34", "b"))
        + b_pad * LANE * 4
    )

    q_pad = pl.pallas_call(
        dueling_dqn_kernel,
        out_shape=jax.ShapeDtypeStruct((b_pad, LANE), jnp.float32),
        grid_spec=pltpu.PrefetchScalarGridSpec(
            num_scalar_prefetch=0,
            grid=grid,
            in_specs=[
                # Batch-tiled activation input (auto double-buffered).
                pl.BlockSpec((tb, in_size), lambda i: (i, 0)),
                # Weights + fused bias: constant index_map -> DMA'd once, resident.
                pl.BlockSpec((in_size, 256), lambda i: (0, 0)),
                pl.BlockSpec((256, LANE), lambda i: (0, 0)),
                pl.BlockSpec((LANE, 2 * LANE), lambda i: (0, 0)),
                pl.BlockSpec((1, 5 * LANE), lambda i: (0, 0)),
            ],
            out_specs=pl.BlockSpec((tb, LANE), lambda i: (i, 0)),
        ),
        compiler_params=pltpu.CompilerParams(
            dimension_semantics=("parallel",),          # shard batch tiles over TCs
            vmem_limit_bytes=vmem_limit_bytes),
        cost_estimate=pl.CostEstimate(
            flops=flops, transcendentals=0, bytes_accessed=bytes_accessed),
    )(x_p, fused["w1"], fused["w2"], fused["w34"], fused["b"])

    return q_pad[:batch, :num_actions]


# --------------------------------------------------------------------------- #
# Init + references
# --------------------------------------------------------------------------- #
def init_params(key, input_size, num_actions):
    """PyTorch-style uniform(-1/sqrt(fan_in), 1/sqrt(fan_in)) init; W as (in, out)."""
    dims = {
        "w1": (input_size, 256), "b1": (1, 256),
        "w2": (256, 128),        "b2": (1, 128),
        "wv1": (128, 64),        "bv1": (1, 64),
        "wv2": (64, 1),          "bv2": (1, 1),
        "wa1": (128, 64),        "ba1": (1, 64),
        "wa2": (64, num_actions), "ba2": (1, num_actions),
    }
    fan_in = {
        "w1": input_size, "b1": input_size, "w2": 256, "b2": 256,
        "wv1": 128, "bv1": 128, "wv2": 64, "bv2": 64,
        "wa1": 128, "ba1": 128, "wa2": 64, "ba2": 64,
    }
    params = {}
    for k, name in zip(jax.random.split(key, len(dims)), dims):
        bound = 1.0 / np.sqrt(fan_in[name])
        params[name] = jax.random.uniform(
            k, dims[name], jnp.float32, minval=-bound, maxval=bound)
    return params


def reference_forward_f32(x_flat, p):
    """Pure-JAX f32 reference with the PyTorch module's exact math."""
    h = jnp.maximum(x_flat @ p["w1"] + p["b1"], 0.0)
    h = jnp.maximum(h @ p["w2"] + p["b2"], 0.0)
    v = jnp.maximum(h @ p["wv1"] + p["bv1"], 0.0) @ p["wv2"] + p["bv2"]
    a = jnp.maximum(h @ p["wa1"] + p["ba1"], 0.0) @ p["wa2"] + p["ba2"]
    return v + (a - a.mean(axis=1, keepdims=True))


def reference_forward_matched(x_flat, p, num_actions, dtype=jnp.bfloat16):
    """Same math with the kernel's bf16 casts and the f32 dueling fold."""
    A = num_actions
    c = lambda t: t.astype(dtype).astype(jnp.float32)
    h = jnp.maximum(c(x_flat) @ c(p["w1"]) + p["b1"], 0.0)
    h = jnp.maximum(c(h) @ c(p["w2"]) + p["b2"], 0.0)
    v1 = jnp.maximum(c(h) @ c(p["wv1"]) + p["bv1"], 0.0)
    a1 = jnp.maximum(c(h) @ c(p["wa1"]) + p["ba1"], 0.0)
    wa2_c = p["wa2"] - p["wa2"].mean(axis=1, keepdims=True)
    ba2_c = p["ba2"] - p["ba2"].mean(axis=1, keepdims=True)
    wv2_b = jnp.broadcast_to(p["wv2"], (64, A))
    return c(v1) @ c(wv2_b) + c(a1) @ c(wa2_c) + (ba2_c + p["bv2"])


# --------------------------------------------------------------------------- #
# Demo / self-test
# --------------------------------------------------------------------------- #
if __name__ == "__main__":
    # Board dims: height=16, width=16, depth=4
    #   input_size  = 16 * 16 * 4 = 1024,  num_actions = depth * width = 64
    height, width, depth = 16, 16, 4
    batch = 2
    input_size = height * width * depth
    num_actions = depth * width

    key = jax.random.PRNGKey(0)
    k_x, k_p = jax.random.split(key)

    # Layout: (B, H, W, D) flattened row-major, same as nn.Flatten.
    x = jax.random.normal(k_x, (batch, height, width, depth), jnp.float32)
    x_flat = x.reshape(batch, input_size)

    params = init_params(k_p, input_size, num_actions)
    fused = fuse_params(params, num_actions, weight_dtype=jnp.bfloat16)

    q = dueling_dqn_forward(x_flat, fused)
    q = jax.block_until_ready(q)
    assert q.shape == (batch, num_actions)

    # Tight check against a reference that mirrors the kernel's bf16 math.
    q_matched = reference_forward_matched(x_flat, params, num_actions)
    np.testing.assert_allclose(np.asarray(q), np.asarray(q_matched),
                               rtol=2e-3, atol=2e-3)

    # Loose check against the exact f32 PyTorch-module math.
    q_f32 = reference_forward_f32(x_flat, params)
    np.testing.assert_allclose(np.asarray(q), np.asarray(q_f32),
                               rtol=5e-2, atol=5e-2)

    # Exercise the multi-tile batch grid (grid > 1, padded last tile).
    batch2 = 40
    x2 = jax.random.normal(jax.random.PRNGKey(1), (batch2, input_size), jnp.float32)
    q2 = jax.block_until_ready(dueling_dqn_forward(x2, fused, tb_max=16))
    assert q2.shape == (batch2, num_actions)
    np.testing.assert_allclose(
        np.asarray(q2),
        np.asarray(reference_forward_matched(x2, params, num_actions)),
        rtol=2e-3, atol=2e-3)

    print("KERNEL_OK")
</pallas_src>

<mosaic_0001>
module attributes {stable_mosaic.version = 11 : i64} {
  func.func @dueling_dqn_kernel(%arg0: i32, %arg1: memref<16x1024xf32, #tpu.memory_space<vmem>>, %arg2: memref<1024x256xbf16, #tpu.memory_space<vmem>>, %arg3: memref<256x128xbf16, #tpu.memory_space<vmem>>, %arg4: memref<128x256xbf16, #tpu.memory_space<vmem>>, %arg5: memref<1x640xf32, #tpu.memory_space<vmem>>, %arg6: memref<16x128xf32, #tpu.memory_space<vmem>>) attributes {dimension_semantics = [#tpu.dimension_semantics<parallel>], iteration_bounds = array<i64: 1>, scalar_prefetch = 0 : i64, scratch_operands = 0 : i64, tpu.core_type = #tpu.core_type<tc>, window_params = [{transform_indices = @transform_0, window_bounds = array<i64: 16, 1024>}, {pipeline_mode = #tpu.pipeline_mode<synchronous>, transform_indices = @transform_1, window_bounds = array<i64: 1024, 256>}, {pipeline_mode = #tpu.pipeline_mode<synchronous>, transform_indices = @transform_2, window_bounds = array<i64: 256, 128>}, {pipeline_mode = #tpu.pipeline_mode<synchronous>, transform_indices = @transform_3, window_bounds = array<i64: 128, 256>}, {pipeline_mode = #tpu.pipeline_mode<synchronous>, transform_indices = @transform_4, window_bounds = array<i64: 1, 640>}, {transform_indices = @transform_5, window_bounds = array<i64: 16, 128>}]} {
    %c0 = arith.constant 0 : index
    %c0_0 = arith.constant 0 : index
    %0 = vector.load %arg5[%c0, %c0_0] : memref<1x640xf32, #tpu.memory_space<vmem>>, vector<1x256xf32>
    %c0_1 = arith.constant 0 : index
    %c256 = arith.constant 256 : index
    %1 = vector.load %arg5[%c0_1, %c256] : memref<1x640xf32, #tpu.memory_space<vmem>>, vector<1x128xf32>
    %c0_2 = arith.constant 0 : index
    %c384 = arith.constant 384 : index
    %2 = vector.load %arg5[%c0_2, %c384] : memref<1x640xf32, #tpu.memory_space<vmem>>, vector<1x128xf32>
    %c0_3 = arith.constant 0 : index
    %c512 = arith.constant 512 : index
    %3 = vector.load %arg5[%c0_3, %c512] : memref<1x640xf32, #tpu.memory_space<vmem>>, vector<1x128xf32>
    %c0_4 = arith.constant 0 : index
    %c0_5 = arith.constant 0 : index
    %4 = vector.load %arg4[%c0_4, %c0_5] : memref<128x256xbf16, #tpu.memory_space<vmem>>, vector<128x128xbf16>
    %c0_6 = arith.constant 0 : index
    %c128 = arith.constant 128 : index
    %5 = vector.load %arg4[%c0_6, %c128] : memref<128x256xbf16, #tpu.memory_space<vmem>>, vector<128x128xbf16>
    %c0_7 = arith.constant 0 : index
    %c0_8 = arith.constant 0 : index
    %6 = vector.load %arg1[%c0_7, %c0_8] : memref<16x1024xf32, #tpu.memory_space<vmem>>, vector<16x1024xf32>
    %7 = arith.truncf %6 : vector<16x1024xf32> to vector<16x1024xbf16>
    %c0_9 = arith.constant 0 : index
    %c0_10 = arith.constant 0 : index
    %8 = vector.load %arg2[%c0_9, %c0_10] : memref<1024x256xbf16, #tpu.memory_space<vmem>>, vector<1024x256xbf16>
    %cst = arith.constant dense<0.000000e+00> : vector<16x256xf32>
    %9 = tpu.matmul %7, %8, %cst {dimension_numbers = #tpu.dot_dimension_numbers<[1], [0], [0], [1], [0, 0, 1, 1], [], []>} : vector<16x1024xbf16>, vector<1024x256xbf16>, vector<16x256xf32> -> vector<16x256xf32>
    %10 = vector.broadcast %0 : vector<1x256xf32> to vector<16x256xf32>
    %11 = arith.addf %9, %10 : vector<16x256xf32>
    %cst_11 = arith.constant 0.000000e+00 : f32
    %12 = vector.broadcast %cst_11 : f32 to vector<16x256xf32>
    %13 = arith.maximumf %11, %12 : vector<16x256xf32>
    %14 = arith.truncf %13 : vector<16x256xf32> to vector<16x256xbf16>
    %c0_12 = arith.constant 0 : index
    %c0_13 = arith.constant 0 : index
    %15 = vector.load %arg3[%c0_12, %c0_13] : memref<256x128xbf16, #tpu.memory_space<vmem>>, vector<256x128xbf16>
    %cst_14 = arith.constant dense<0.000000e+00> : vector<16x128xf32>
    %16 = tpu.matmul %14, %15, %cst_14 {dimension_numbers = #tpu.dot_dimension_numbers<[1], [0], [0], [1], [0, 0, 1, 1], [], []>} : vector<16x256xbf16>, vector<256x128xbf16>, vector<16x128xf32> -> vector<16x128xf32>
    %17 = vector.broadcast %1 : vector<1x128xf32> to vector<16x128xf32>
    %18 = arith.addf %16, %17 : vector<16x128xf32>
    %cst_15 = arith.constant 0.000000e+00 : f32
    %19 = vector.broadcast %cst_15 : f32 to vector<16x128xf32>
    %20 = arith.maximumf %18, %19 : vector<16x128xf32>
    %21 = arith.truncf %20 : vector<16x128xf32> to vector<16x128xbf16>
    %cst_16 = arith.constant dense<0.000000e+00> : vector<16x128xf32>
    %22 = tpu.matmul %21, %4, %cst_16 {dimension_numbers = #tpu.dot_dimension_numbers<[1], [0], [0], [1], [0, 0, 1, 1], [], []>} : vector<16x128xbf16>, vector<128x128xbf16>, vector<16x128xf32> -> vector<16x128xf32>
    %23 = vector.broadcast %2 : vector<1x128xf32> to vector<16x128xf32>
    %24 = arith.addf %22, %23 : vector<16x128xf32>
    %cst_17 = arith.constant 0.000000e+00 : f32
    %25 = vector.broadcast %cst_17 : f32 to vector<16x128xf32>
    %26 = arith.maximumf %24, %25 : vector<16x128xf32>
    %27 = arith.truncf %26 : vector<16x128xf32> to vector<16x128xbf16>
    %cst_18 = arith.constant dense<0.000000e+00> : vector<16x128xf32>
    %28 = tpu.matmul %27, %5, %cst_18 {dimension_numbers = #tpu.dot_dimension_numbers<[1], [0], [0], [1], [0, 0, 1, 1], [], []>} : vector<16x128xbf16>, vector<128x128xbf16>, vector<16x128xf32> -> vector<16x128xf32>
    %29 = vector.broadcast %3 : vector<1x128xf32> to vector<16x128xf32>
    %30 = arith.addf %28, %29 : vector<16x128xf32>
    %c0_19 = arith.constant 0 : index
    %c0_20 = arith.constant 0 : index
    %31 = vector.load %arg6[%c0_19, %c0_20] : memref<16x128xf32, #tpu.memory_space<vmem>>, vector<16x128xf32>
    tpu.vector_store %arg6[%c0_19, %c0_20], %30 {strides = array<i32>} : memref<16x128xf32, #tpu.memory_space<vmem>>, vector<16x128xf32>,
    return
  }
  func.func @transform_0(%arg0: i32) -> (i32, i32) {
    %c0_i32 = arith.constant 0 : i32
    %c0_i32_0 = arith.constant 0 : i32
    return %arg0, %c0_i32 : i32, i32
  }
  func.func @transform_1(%arg0: i32) -> (i32, i32) {
    %c0_i32 = arith.constant 0 : i32
    %c0_i32_0 = arith.constant 0 : i32
    %c0_i32_1 = arith.constant 0 : i32
    return %c0_i32, %c0_i32_0 : i32, i32
  }
  func.func @transform_2(%arg0: i32) -> (i32, i32) {
    %c0_i32 = arith.constant 0 : i32
    %c0_i32_0 = arith.constant 0 : i32
    %c0_i32_1 = arith.constant 0 : i32
    return %c0_i32, %c0_i32_0 : i32, i32
  }
  func.func @transform_3(%arg0: i32) -> (i32, i32) {
    %c0_i32 = arith.constant 0 : i32
    %c0_i32_0 = arith.constant 0 : i32
    %c0_i32_1 = arith.constant 0 : i32
    return %c0_i32, %c0_i32_0 : i32, i32
  }
  func.func @transform_4(%arg0: i32) -> (i32, i32) {
    %c0_i32 = arith.constant 0 : i32
    %c0_i32_0 = arith.constant 0 : i32
    %c0_i32_1 = arith.constant 0 : i32
    return %c0_i32, %c0_i32_0 : i32, i32
  }
  func.func @transform_5(%arg0: i32) -> (i32, i32) {
    %c0_i32 = arith.constant 0 : i32
    %c0_i32_0 = arith.constant 0 : i32
    return %arg0, %c0_i32 : i32, i32
  }
}

</mosaic_0001>

<bundles_post_ra>
// kernel: tpu_custom_call.1
= control target key start
LH: loop header
LB: loop body
LE: loop exit
PB: predicated region body
PF: predicated region fallthrough
CT: control target
= control target key end

     0   :  { %10 = vsyncpa [#allocation3], 0  ;;  %s2242_s0 = inlined_call_operand.hbm [shape: f32[16,1024], index: 0, kind: input, shape index: {}]   ;;  %s2243_s1 = inlined_call_operand.hbm [shape: bf16[1024,256], index: 1, kind: input, shape index: {}]   ;;  %s2244_s2 = inlined_call_operand.hbm [shape: bf16[256,128], index: 2, kind: input, shape index: {}]   ;;  %s2245_s3 = inlined_call_operand.hbm [shape: bf16[128,256], index: 3, kind: input, shape index: {}]   ;;  %s2246_s4 = inlined_call_operand.vmem [shape: f32[1,640], index: 4, kind: input, shape index: {}]   ;;  %s2247_s5 = inlined_call_operand.hbm [shape: f32[16,128], index: 5, kind: output, shape index: {}]  }
   0x1   :  { %11 = vsyncpa [#allocation6], 0 }
   0x2   :  { %12 = vsyncpa [#allocation9], 0 }
   0x3   :  { %13 = vsyncpa [#allocation4], 0  ;;  %s2099_s18 = smov [#allocation5]   ;;  %s1981_s22 = scalar_lea.hbm %s2243_s1, 16384 }
   0x4   :  { %s31_s19 = sshll.u32 %s2099_s18, 4  ;;  %p1982_p0 = scmp.ne.s32.totalorder %s2243_s1, %s1981_s22  ;;  %s32_s19 = int_to_ptr.vmem [resolvable:$true] %s31_s19 }
   0x5   :  { %p1985_p1 = scmp.lt.u32.totalorder %s1981_s22, %s2243_s1 }
   0x7   :  { %p1987_p2 = pnand %p1985_p1, %p1982_p0 }
   0x9   :  { %1990 = shalt.err (!%p1987_p2)
}
   0xa   :  { %s1991_s27 = scalar_lea.vmem %s32_s19, 16384  ;;  %p1996_p4 = scmp.lt.s32.totalorder %s32_s19, %s32_s19 }
   0xb   :  { %p1992_p3 = scmp.ne.s32.totalorder %s32_s19, %s1991_s27  ;;  %p1997_p5 = scmp.lt.s32.totalorder %s1991_s27, %s1991_s27 }
   0xd   :  { %p1998_p6 = por %p1997_p5, %p1996_p4 }
   0xf   :  { %p1999_p7 = pnand %p1998_p6, %p1992_p3 }
  0x11   :  { %2002 = shalt.err (!%p1999_p7)
}
  0x12   :  { %s2100_s28 = smov 128   ;;  %s2101_s29 = smov 8  }
  0x13   :  { %37 = dma.hbm_to_vmem [thread:$0]  %s2243_s1, 16384, %s32_s19, [#allocation6], %s2100_s28, %s2100_s28, %s2101_s29  }
  0x14   :  { %s2102_s7 = smov [#allocation2]   ;;  %s2003_s11 = scalar_lea.hbm %s2242_s0, 2048 }
  0x15   :  { %s19_s8 = sshll.u32 %s2102_s7, 4  ;;  %p2004_p8 = scmp.ne.s32.totalorder %s2242_s0, %s2003_s11  ;;  %s20_s8 = int_to_ptr.vmem [resolvable:$true] %s19_s8 }
  0x16   :  { %p2007_p9 = scmp.lt.u32.totalorder %s2003_s11, %s2242_s0 }
  0x18   :  { %p2009_p10 = pnand %p2007_p9, %p2004_p8 }
  0x1a   :  { %2012 = shalt.err (!%p2009_p10)
}
  0x1b   :  { %s2013_s16 = scalar_lea.vmem %s20_s8, 2048  ;;  %p2018_p12 = scmp.lt.s32.totalorder %s20_s8, %s20_s8 }
  0x1c   :  { %p2014_p11 = scmp.ne.s32.totalorder %s20_s8, %s2013_s16  ;;  %p2019_p13 = scmp.lt.s32.totalorder %s2013_s16, %s2013_s16 }
  0x1e   :  { %p2020_p0 = por %p2019_p13, %p2018_p12 }
  0x20   :  { %p2021_p1 = pnand %p2020_p0, %p2014_p11 }
  0x22   :  { %2024 = shalt.err (!%p2021_p1)
}
  0x23   :  { %s2103_s1 = smov 1024   ;;  %s2104_s17 = smov 64  }
  0x24   :  { %25 = dma.hbm_to_vmem [thread:$0]  %s2242_s0, 2048, %s20_s8, [#allocation3], %s2103_s1, %s2103_s1, %s2104_s17  }
  0x25   :  { %s2105_s20 = smov [#allocation7]   ;;  %s2106_s22 = smov [#allocation8]  }
  0x26   :  { %s43_s21 = sshll.u32 %s2105_s20, 4  ;;  %s55_s23 = sshll.u32 %s2106_s22, 4  ;;  %s44_s21 = int_to_ptr.vmem [resolvable:$true] %s43_s21  ;;  %s56_s23 = int_to_ptr.vmem [resolvable:$true] %s55_s23 }
  0x27   :  { %s2025_s26 = scalar_lea.hbm %s2244_s2, 2048 }
  0x28   :  { %p2026_p2 = scmp.ne.s32.totalorder %s2244_s2, %s2025_s26  ;;  %p2029_p3 = scmp.lt.u32.totalorder %s2025_s26, %s2244_s2 }
  0x2a   :  { %p2031_p4 = pnand %p2029_p3, %p2026_p2 }
  0x2c   :  { %2034 = shalt.err (!%p2031_p4)
}
  0x2d   :  { %s2035_s0 = scalar_lea.vmem %s44_s21, 2048  ;;  %p2040_p6 = scmp.lt.s32.totalorder %s44_s21, %s44_s21 }
  0x2e   :  { %p2036_p5 = scmp.ne.s32.totalorder %s44_s21, %s2035_s0  ;;  %p2041_p7 = scmp.lt.s32.totalorder %s2035_s0, %s2035_s0 }
  0x30   :  { %p2042_p8 = por %p2041_p7, %p2040_p6 }
  0x32   :  { %p2043_p9 = pnand %p2042_p8, %p2036_p5 }
  0x34   :  { %2046 = shalt.err (!%p2043_p9)
}
  0x35   :  { %s2107_s8 = smov 4   ;;  %s2047_s13 = scalar_lea.hbm %s2245_s3, 2048 }
  0x36   :  { %49 = dma.hbm_to_vmem [thread:$0]  %s2244_s2, 2048, %s44_s21, [#allocation6], %s2104_s17, %s2104_s17, %s2107_s8  }
  0x37   :  { %p2048_p10 = scmp.ne.s32.totalorder %s2245_s3, %s2047_s13  ;;  %p2051_p11 = scmp.lt.u32.totalorder %s2047_s13, %s2245_s3 }
  0x39   :  { %p2053_p12 = pnand %p2051_p11, %p2048_p10 }
  0x3b   :  { %2056 = shalt.err (!%p2053_p12)
}
  0x3c   :  { %s2057_s18 = scalar_lea.vmem %s56_s23, 2048  ;;  %p2062_p0 = scmp.lt.s32.totalorder %s56_s23, %s56_s23 }
  0x3d   :  { %p2058_p13 = scmp.ne.s32.totalorder %s56_s23, %s2057_s18  ;;  %p2063_p1 = scmp.lt.s32.totalorder %s2057_s18, %s2057_s18 }
  0x3f   :  { %p2064_p2 = por %p2063_p1, %p2062_p0 }
  0x41   :  { %p2065_p3 = pnand %p2064_p2, %p2058_p13 }
  0x43   :  { %2068 = shalt.err (!%p2065_p3)
}
  0x44   :  { %61 = dma.hbm_to_vmem [thread:$0]  %s2245_s3, 2048, %s56_s23, [#allocation9], %s2100_s28, %s2100_s28, %s2101_s29  }
  0x45   :  { %2091 = dma.done.wait [#allocation3], 2048  }
  0x46   :  { %2092 = vsyncadd [#allocation3], 4294965248 }
  0x47   :  { %2093 = dma.done.wait [#allocation6], 18432  }
  0x48   :  { %2094 = vsyncadd [#allocation6], 4294948864 }
  0x49   :  { %2095 = dma.done.wait [#allocation9], 2048  }
  0x4a   :  { %2096 = vsyncadd [#allocation9], 4294965248  ;;  %v1757_v0 = vld [vmem:[#allocation5 + $0x104] ss:$8 sps:$4 sm:$0xff]   ;;  %v1759_v1 = vld [vmem:[#allocation5 + $0x100] ss:$8 sps:$4 sm:$0xff]  }
  0x4b   :  { %959 = vmatprep.subr.bf16.mxu0 %v1757_v0  ;;  %v1760_v2 = vld [vmem:[#allocation5 + $0x114] ss:$8 sps:$4 sm:$0xff]   ;;  %v1762_v3 = vld [vmem:[#allocation5 + $0x110] ss:$8 sps:$4 sm:$0xff]   ;;  %v1763_v4 = vld [vmem:[#allocation5 + $0x124] ss:$8 sps:$4 sm:$0xff]  }
  0x4c   :  { %960 = vmatpush1.bf16.msra.mxu0 %v1759_v1  ;;  %v1765_v5 = vld [vmem:[#allocation5 + $0x120] ss:$8 sps:$4 sm:$0xff]   ;;  %v1766_v6 = vld [vmem:[#allocation5 + $0x134] ss:$8 sps:$4 sm:$0xff]   ;;  %v1768_v7 = vld [vmem:[#allocation5 + $0x130] ss:$8 sps:$4 sm:$0xff]  }
  0x4d   :  { %961 = vmatprep.subr.bf16.mxu0 %v1760_v2  ;;  %v1769_v8 = vld [vmem:[#allocation5 + $0x144] ss:$8 sps:$4 sm:$0xff]   ;;  %v1771_v9 = vld [vmem:[#allocation5 + $0x140] ss:$8 sps:$4 sm:$0xff]   ;;  %v1772_v10 = vld [vmem:[#allocation5 + $0x154] ss:$8 sps:$4 sm:$0xff]  }
  0x4e   :  { %v1774_v11 = vld [vmem:[#allocation5 + $0x150] ss:$8 sps:$4 sm:$0xff]   ;;  %v1775_v12 = vld [vmem:[#allocation5 + $0x164] ss:$8 sps:$4 sm:$0xff]   ;;  %v1777_v16 = vld [vmem:[#allocation5 + $0x160] ss:$8 sps:$4 sm:$0xff]  }
  0x4f   :  { %v116_v13 = vld [vmem:[#allocation2 + $0x18] sm:$0xff]  ;;  %v1781_v19 = vld [vmem:[#allocation5 + $0x184] ss:$8 sps:$4 sm:$0xff]   ;;  %v1783_v20 = vld [vmem:[#allocation5 + $0x180] ss:$8 sps:$4 sm:$0xff]   ;;  %vm2109_vm0 = vmmov 0  }
  0x50   :  { %962 = vmatpush1.bf16.msra.mxu0 %v1762_v3  ;;  %v124_v14 = vld [vmem:[#allocation2 + $0x58] sm:$0xff]  ;;  %v1787_v23 = vld [vmem:[#allocation5 + $0x1a4] ss:$8 sps:$4 sm:$0xff]   ;;  %v1789_v24 = vld [vmem:[#allocation5 + $0x1a0] ss:$8 sps:$4 sm:$0xff]   ;;  %s2110_s26 = smov [#allocation10]  }
  0x51   :  { %963 = vmatprep.subr.bf16.mxu0 %v1763_v4  ;;  %v132_v15 = vpack.c.bf16 %v124_v14, %v116_v13  ;;  %v1778_v17 = vld [vmem:[#allocation5 + $0x174] ss:$8 sps:$4 sm:$0xff]   ;;  %v1780_v18 = vld [vmem:[#allocation5 + $0x170] ss:$8 sps:$4 sm:$0xff]   ;;  %v1850_v27 = vld [vmem:[#allocation5 + $0x4] ss:$8 sps:$4 sm:$0xff]  }
  0x52   :  { %v1784_v21 = vld [vmem:[#allocation5 + $0x194] ss:$8 sps:$4 sm:$0xff]   ;;  %v1786_v22 = vld [vmem:[#allocation5 + $0x190] ss:$8 sps:$4 sm:$0xff]   ;;  %v1852_v28 = vld [vmem:[#allocation5] ss:$8 sps:$4 sm:$0xff]   ;;  %916 = vmatprep.subr.bf16.mxu1 %v1850_v27 }
  0x53   :  { %991 = vmatprep.mubr.bf16.mxu0 %v132_v15  ;;  %v1790_v25 = vld [vmem:[#allocation5 + $0x1b4] ss:$8 sps:$4 sm:$0xff]   ;;  %v1792_v26 = vld [vmem:[#allocation5 + $0x1b0] ss:$8 sps:$4 sm:$0xff]   ;;  %v1793_v29 = vld [vmem:[#allocation5 + $0x1c4] ss:$8 sps:$4 sm:$0xff]   ;;  %917 = vmatpush1.bf16.msra.mxu1 %v1852_v28 }
  0x54   :  { %964 = vmatpush1.bf16.msra.mxu0 %v1765_v5  ;;  %v1856_v30 = vld [vmem:[#allocation5 + $0x14] ss:$8 sps:$4 sm:$0xff]   ;;  %v1858_v31 = vld [vmem:[#allocation5 + $0x10] ss:$8 sps:$4 sm:$0xff]   ;;  %v1795_v32 = vld [vmem:[#allocation5 + $0x1c0] ss:$8 sps:$4 sm:$0xff]  }
  0x55   :  { %965 = vmatprep.subr.bf16.mxu0 %v1766_v6  ;;  %v1796_v33 = vld [vmem:[#allocation5 + $0x1d4] ss:$8 sps:$4 sm:$0xff]   ;;  %918 = vmatprep.subr.bf16.mxu1 %v1856_v30  ;;  %v1862_v34 = vld [vmem:[#allocation5 + $0x24] ss:$8 sps:$4 sm:$0xff]   ;;  %v1864_v35 = vld [vmem:[#allocation5 + $0x20] ss:$8 sps:$4 sm:$0xff]  }
  0x56   :  { %v1798_v36 = vld [vmem:[#allocation5 + $0x1d0] ss:$8 sps:$4 sm:$0xff]   ;;  %v1799_v37 = vld [vmem:[#allocation5 + $0x1e4] ss:$8 sps:$4 sm:$0xff]   ;;  %v1868_v38 = vld [vmem:[#allocation5 + $0x34] ss:$8 sps:$4 sm:$0xff]  }
  0x57   :  { %919 = vmatpush1.bf16.msra.mxu1 %v1858_v31  ;;  %v1870_v39 = vld [vmem:[#allocation5 + $0x30] ss:$8 sps:$4 sm:$0xff]   ;;  %v1801_v40 = vld [vmem:[#allocation5 + $0x1e0] ss:$8 sps:$4 sm:$0xff]   ;;  %v1874_v41 = vld [vmem:[#allocation5 + $0x44] ss:$8 sps:$4 sm:$0xff]  }
  0x58   :  { %966 = vmatpush1.bf16.msra.mxu0 %v1768_v7  ;;  %920 = vmatprep.subr.bf16.mxu1 %v1862_v34  ;;  %v1802_v42 = vld [vmem:[#allocation5 + $0x1f4] ss:$8 sps:$4 sm:$0xff]   ;;  %v1804_v43 = vld [vmem:[#allocation5 + $0x1f0] ss:$8 sps:$4 sm:$0xff]   ;;  %v1807_v45 = vld [vmem:[#allocation5 + $0x204] ss:$8 sps:$4 sm:$0xff]  }
  0x59   :  { %967 = vmatprep.subr.bf16.mxu0 %v1769_v8  ;;  %v115_v44 = vld [vmem:[#allocation2 + $0x10] sm:$0xff]  ;;  %v1876_v47 = vld [vmem:[#allocation5 + $0x40] ss:$8 sps:$4 sm:$0xff]   ;;  %v1886_v56 = vld [vmem:[#allocation5 + $0x64] ss:$8 sps:$4 sm:$0xff]   ;;  %s1472_s27 = sshll.u32 %s2110_s26, 4  ;;  %s1473_s27 = int_to_ptr.vmem [resolvable:$true] %s1472_s27 }
  0x5a   :  { %v123_v46 = vld [vmem:[#allocation2 + $0x50] sm:$0xff]  ;;  %v118_v48 = vld [vmem:[#allocation2 + $0x28] sm:$0xff]  ;;  %v121_v34 = vld [vmem:[#allocation2 + $0x40] sm:$0xff]  ;;  %s2069_s30 = scalar_lea.vmem %s1473_s27, 256  ;;  %p2074_p5 = scmp.lt.s32.totalorder %s1473_s27, %s1473_s27 }
  0x5b   :  { %921 = vmatpush1.bf16.msra.mxu1 %v1864_v35  ;;  %v1880_v49 = vld [vmem:[#allocation5 + $0x54] ss:$8 sps:$4 sm:$0xff]   ;;  %v126_v50 = vld [vmem:[#allocation2 + $0x68] sm:$0xff]  ;;  %v131_v51 = vpack.c.bf16 %v123_v46, %v115_v44  ;;  %v1882_v52 = vld [vmem:[#allocation5 + $0x50] ss:$8 sps:$4 sm:$0xff]   ;;  %p2070_p4 = scmp.ne.s32.totalorder %s1473_s27, %s2069_s30  ;;  %p2075_p6 = scmp.lt.s32.totalorder %s2069_s30, %s2069_s30 }
  0x5c   :  { %968 = vmatpush1.bf16.msra.mxu0 %v1771_v9  ;;  %922 = vmatprep.subr.bf16.mxu1 %v1868_v38  ;;  %v1805_v53 = vld [vmem:[#allocation5 + $0x200] ss:$8 sps:$4 sm:$0xff]   ;;  %v1810_v54 = vld [vmem:[#allocation5 + $0x214] ss:$8 sps:$4 sm:$0xff]   ;;  %v134_v55 = vpack.c.bf16 %v126_v50, %v118_v48  ;;  %v1808_v58 = vld [vmem:[#allocation5 + $0x210] ss:$8 sps:$4 sm:$0xff]  }
  0x5d   :  { %969 = vmatprep.subr.bf16.mxu0 %v1772_v10  ;;  %v1888_v57 = vld [vmem:[#allocation5 + $0x60] ss:$8 sps:$4 sm:$0xff]   ;;  %v1892_v59 = vld [vmem:[#allocation5 + $0x74] ss:$8 sps:$4 sm:$0xff]   ;;  %v1813_v60 = vld [vmem:[#allocation5 + $0x224] ss:$8 sps:$4 sm:$0xff]   ;;  %p2076_p7 = por %p2075_p6, %p2074_p5 }
  0x5e   :  { %v1894_v61 = vld [vmem:[#allocation5 + $0x70] ss:$8 sps:$4 sm:$0xff]   ;;  %v1811_v62 = vld [vmem:[#allocation5 + $0x220] ss:$8 sps:$4 sm:$0xff]   ;;  %v1898_v63 = vld [vmem:[#allocation5 + $0x84] ss:$8 sps:$4 sm:$0xff]  }
  0x5f   :  { %923 = vmatpush1.bf16.msra.mxu1 %v1870_v39  ;;  %v1816_v0 = vld [vmem:[#allocation5 + $0x234] ss:$8 sps:$4 sm:$0xff]   ;;  %v1900_v1 = vld [vmem:[#allocation5 + $0x80] ss:$8 sps:$4 sm:$0xff]   ;;  %v1814_v2 = vld [vmem:[#allocation5 + $0x230] ss:$8 sps:$4 sm:$0xff]   ;;  %p2077_p8 = pnand %p2076_p7, %p2070_p4 }
  0x60   :  { %970 = vmatpush1.bf16.msra.mxu0 %v1774_v11  ;;  %924 = vmatprep.subr.bf16.mxu1 %v1874_v41  ;;  %v1904_v3 = vld [vmem:[#allocation5 + $0x94] ss:$8 sps:$4 sm:$0xff]   ;;  %v1819_v4 = vld [vmem:[#allocation5 + $0x244] ss:$8 sps:$4 sm:$0xff]   ;;  %v1906_v5 = vld [vmem:[#allocation5 + $0x90] ss:$8 sps:$4 sm:$0xff]  }
  0x61   :  { %971 = vmatprep.subr.bf16.mxu0 %v1775_v12  ;;  %v1817_v6 = vld [vmem:[#allocation5 + $0x240] ss:$8 sps:$4 sm:$0xff]   ;;  %v1910_v7 = vld [vmem:[#allocation5 + $0xa4] ss:$8 sps:$4 sm:$0xff]   ;;  %v1822_v8 = vld [vmem:[#allocation5 + $0x254] ss:$8 sps:$4 sm:$0xff]  }
  0x62   :  { %v1912_v9 = vld [vmem:[#allocation5 + $0xa0] ss:$8 sps:$4 sm:$0xff]   ;;  %v1820_v10 = vld [vmem:[#allocation5 + $0x250] ss:$8 sps:$4 sm:$0xff]   ;;  %v1916_v11 = vld [vmem:[#allocation5 + $0xb4] ss:$8 sps:$4 sm:$0xff]  }
  0x63   :  { %925 = vmatpush1.bf16.msra.mxu1 %v1876_v47  ;;  %v1825_v12 = vld [vmem:[#allocation5 + $0x264] ss:$8 sps:$4 sm:$0xff]   ;;  %v1918_v13 = vld [vmem:[#allocation5 + $0xb0] ss:$8 sps:$4 sm:$0xff]   ;;  %v1823_v15 = vld [vmem:[#allocation5 + $0x260] ss:$8 sps:$4 sm:$0xff]  }
  0x64   :  { %972 = vmatpush1.bf16.msra.mxu0 %v1777_v16  ;;  %926 = vmatprep.subr.bf16.mxu1 %v1880_v49  ;;  %v114_v14 = vld [vmem:[#allocation2 + $0x8] sm:$0xff]  ;;  %v1834_v27 = vld [vmem:[#allocation5 + $0x294] ss:$8 sps:$4 sm:$0xff]   ;;  %v1832_v28 = vld [vmem:[#allocation5 + $0x290] ss:$8 sps:$4 sm:$0xff]  }
  0x65   :  { %973 = vmatprep.subr.bf16.mxu0 %v1778_v17  ;;  %v1922_v16 = vld [vmem:[#allocation5 + $0xc4] ss:$8 sps:$4 sm:$0xff]   ;;  %v1936_v30 = vld [vmem:[#allocation5 + $0xe0] ss:$8 sps:$4 sm:$0xff]   ;;  %v1940_v31 = vld [vmem:[#allocation5 + $0xf4] ss:$8 sps:$4 sm:$0xff]  }
  0x66   :  { %v122_v17 = vld [vmem:[#allocation2 + $0x48] sm:$0xff]  ;;  %v1950_v38 = vld [vmem:[#allocation7] sm:$0xff]   ;;  %v1838_v39 = vld [vmem:[#allocation5 + $0x2b0] ss:$8 sps:$4 sm:$0xff]  }
  0x67   :  { %927 = vmatpush1.bf16.msra.mxu1 %v1882_v52  ;;  %v1835_v35 = vld [vmem:[#allocation5 + $0x2a0] ss:$8 sps:$4 sm:$0xff]   ;;  %v1846_v46 = vld [vmem:[#allocation5 + $0x2d4] ss:$8 sps:$4 sm:$0xff]   ;;  %v1844_v48 = vld [vmem:[#allocation5 + $0x2d0] ss:$8 sps:$4 sm:$0xff]  }
  0x68   :  { %974 = vmatpush1.bf16.msra.mxu0 %v1780_v18  ;;  %928 = vmatprep.subr.bf16.mxu1 %v1886_v56  ;;  %v1828_v18 = vld [vmem:[#allocation5 + $0x274] ss:$8 sps:$4 sm:$0xff]   ;;  %v1951_v41 = vld [vmem:[#allocation7 + $0x48] sm:$0xff]   ;;  %v125_v56 = vld [vmem:[#allocation2 + $0x60] sm:$0xff] }
  0x69   :  { %975 = vmatprep.subr.bf16.mxu0 %v1781_v19  ;;  %v130_v19 = vpack.c.bf16 %v122_v17, %v114_v14  ;;  %v1841_v44 = vld [vmem:[#allocation5 + $0x2c0] ss:$8 sps:$4 sm:$0xff]   ;;  %v1954_v47 = vld [vmem:[#allocation7 + $0x10] sm:$0xff]   ;;  %v1955_v49 = vld [vmem:[#allocation7 + $0x58] sm:$0xff]  }
  0x6a   :  { %v1849_v50 = vld [vmem:[#allocation5 + $0x2e4] ss:$8 sps:$4 sm:$0xff]   ;;  %v1847_v52 = vld [vmem:[#allocation5 + $0x2e0] ss:$8 sps:$4 sm:$0xff]  }
  0x6b   :  { %929 = vmatpush1.bf16.msra.mxu1 %v1888_v57  ;;  %948 = vmatprep.mubr.bf16.mxu1 %v130_v19  ;;  %v1861_v57 = vld [vmem:[#allocation5 + $0x304] ss:$8 sps:$4 sm:$0xff]   ;;  %v1907_v14 = vld [vmem:[#allocation5 + $0x380] ss:$8 sps:$4 sm:$0xff]   ;;  %v1927_v19 = vld [vmem:[#allocation5 + $0x3b4] ss:$8 sps:$4 sm:$0xff]  }
  0x6c   :  { %976 = vmatpush1.bf16.msra.mxu0 %v1783_v20  ;;  %930 = vmatprep.subr.bf16.mxu1 %v1892_v59  ;;  %v1826_v20 = vld [vmem:[#allocation5 + $0x270] ss:$8 sps:$4 sm:$0xff]   ;;  %v1921_v17 = vld [vmem:[#allocation5 + $0x3a4] ss:$8 sps:$4 sm:$0xff]  }
  0x6d   :  { %977 = vmatprep.subr.bf16.mxu0 %v1784_v21  ;;  %v1924_v21 = vld [vmem:[#allocation5 + $0xc0] ss:$8 sps:$4 sm:$0xff]   ;;  %v128_v59 = vld [vmem:[#allocation2 + $0x78] sm:$0xff] }
  0x6f   :  { %931 = vmatpush1.bf16.msra.mxu1 %v1894_v61  ;;  %v1859_v61 = vld [vmem:[#allocation5 + $0x300] ss:$8 sps:$4 sm:$0xff]  }
  0x70   :  { %978 = vmatpush1.bf16.msra.mxu0 %v1786_v22  ;;  %932 = vmatprep.subr.bf16.mxu1 %v1898_v63  ;;  %v1928_v22 = vld [vmem:[#allocation5 + $0xd4] ss:$8 sps:$4 sm:$0xff]  }
  0x71   :  { %979 = vmatprep.subr.bf16.mxu0 %v1787_v23  ;;  %v1831_v23 = vld [vmem:[#allocation5 + $0x284] ss:$8 sps:$4 sm:$0xff]   ;;  %v1867_v63 = vld [vmem:[#allocation5 + $0x314] ss:$8 sps:$4 sm:$0xff]  }
  0x73   :  { %933 = vmatpush1.bf16.msra.mxu1 %v1900_v1  ;;  %v1873_v1 = vld [vmem:[#allocation5 + $0x324] ss:$8 sps:$4 sm:$0xff]  }
  0x74   :  { %980 = vmatpush1.bf16.msra.mxu0 %v1789_v24  ;;  %934 = vmatprep.subr.bf16.mxu1 %v1904_v3  ;;  %v1829_v24 = vld [vmem:[#allocation5 + $0x280] ss:$8 sps:$4 sm:$0xff]   ;;  %v1879_v3 = vld [vmem:[#allocation5 + $0x334] ss:$8 sps:$4 sm:$0xff]  }
  0x75   :  { %981 = vmatprep.subr.bf16.mxu0 %v1790_v25  ;;  %v1930_v25 = vld [vmem:[#allocation5 + $0xd0] ss:$8 sps:$4 sm:$0xff]  }
  0x77   :  { %935 = vmatpush1.bf16.msra.mxu1 %v1906_v5  ;;  %v1885_v5 = vld [vmem:[#allocation5 + $0x344] ss:$8 sps:$4 sm:$0xff]  }
  0x78   :  { %982 = vmatpush1.bf16.msra.mxu0 %v1792_v26  ;;  %936 = vmatprep.subr.bf16.mxu1 %v1910_v7  ;;  %v1934_v26 = vld [vmem:[#allocation5 + $0xe4] ss:$8 sps:$4 sm:$0xff]   ;;  %v1891_v7 = vld [vmem:[#allocation5 + $0x354] ss:$8 sps:$4 sm:$0xff]  }
  0x79   :  { %983 = vmatprep.subr.bf16.mxu0 %v1793_v29  ;;  %v1837_v29 = vld [vmem:[#allocation5 + $0x2a4] ss:$8 sps:$4 sm:$0xff]  }
  0x7b   :  { %937 = vmatpush1.bf16.msra.mxu1 %v1912_v9  ;;  %v1897_v9 = vld [vmem:[#allocation5 + $0x364] ss:$8 sps:$4 sm:$0xff]  }
  0x7c   :  { %984 = vmatpush1.bf16.msra.mxu0 %v1795_v32  ;;  %938 = vmatprep.subr.bf16.mxu1 %v1916_v11  ;;  %v1942_v32 = vld [vmem:[#allocation5 + $0xf0] ss:$8 sps:$4 sm:$0xff]   ;;  %v1903_v11 = vld [vmem:[#allocation5 + $0x374] ss:$8 sps:$4 sm:$0xff]  }
  0x7d   :  { %985 = vmatprep.subr.bf16.mxu0 %v1796_v33  ;;  %v113_v33 = vld [vmem:[#allocation2] sm:$0xff] }
  0x7f   :  { %939 = vmatpush1.bf16.msra.mxu1 %v1918_v13  ;;  %v1909_v13 = vld [vmem:[#allocation5 + $0x384] ss:$8 sps:$4 sm:$0xff]  }
  0x80   :  { %986 = vmatpush1.bf16.msra.mxu0 %v1798_v36  ;;  %940 = vmatprep.subr.bf16.mxu1 %v1922_v16  ;;  %v1949_v36 = vld [vmem:[#allocation7 + $0x40] sm:$0xff]   ;;  %v1913_v16 = vld [vmem:[#allocation5 + $0x390] ss:$8 sps:$4 sm:$0xff]  }
  0x81   :  { %987 = vmatprep.subr.bf16.mxu0 %v1799_v37  ;;  %v1840_v37 = vld [vmem:[#allocation5 + $0x2b4] ss:$8 sps:$4 sm:$0xff]  }
  0x83   :  { %941 = vmatpush1.bf16.msra.mxu1 %v1924_v21  ;;  %v1933_v21 = vld [vmem:[#allocation5 + $0x3c4] ss:$8 sps:$4 sm:$0xff]  }
  0x84   :  { %988 = vmatpush1.bf16.msra.mxu0 %v1801_v40  ;;  %942 = vmatprep.subr.bf16.mxu1 %v1928_v22  ;;  %v129_v40 = vpack.c.bf16 %v121_v34, %v113_v33  ;;  %v1931_v22 = vld [vmem:[#allocation5 + $0x3c0] ss:$8 sps:$4 sm:$0xff]  }
  0x85   :  { %989 = vmatprep.subr.bf16.mxu0 %v1802_v42  ;;  %v1843_v42 = vld [vmem:[#allocation5 + $0x2c4] ss:$8 sps:$4 sm:$0xff]  }
  0x86   :  { %v1958_v33 = vld [vmem:[#allocation7 + $0x20] sm:$0xff]   ;;  %v1959_v34 = vld [vmem:[#allocation7 + $0x68] sm:$0xff]  }
  0x87   :  { %943 = vmatpush1.bf16.msra.mxu1 %v1930_v25  ;;  %v1945_v25 = vld [vmem:[#allocation5 + $0x3e4] ss:$8 sps:$4 sm:$0xff]  }
  0x88   :  { %990 = vmatpush1.bf16.msra.mxu0 %v1804_v43  ;;  %944 = vmatprep.subr.bf16.mxu1 %v1934_v26  ;;  %v1952_v43 = vld [vmem:[#allocation7 + $0x8] sm:$0xff]  }
  0x89   :  { %1002 = vmatprep.subr.bf16.mxu0 %v1807_v45  ;;  %v1953_v45 = vld [vmem:[#allocation7 + $0x50] sm:$0xff]   ;;  %v1943_v26 = vld [vmem:[#allocation5 + $0x3e0] ss:$8 sps:$4 sm:$0xff]  }
  0x8b   :  { %992 = vmatmul.mubr.bf16.vlgmr.msra.gmra.mrb[0].mxu0 %v131_v51  ;;  %945 = vmatpush1.bf16.msra.mxu1 %v1936_v30  ;;  %v1956_v51 = vld [vmem:[#allocation7 + $0x18] sm:$0xff]   ;;  %v127_v30 = vld [vmem:[#allocation2 + $0x70] sm:$0xff] }
  0x8c   :  { %1003 = vmatpush1.bf16.msra.mxu0 %v1805_v53  ;;  %1034 = vmatprep.mubr.bf16.mxu0 %v134_v55  ;;  %v1855_v53 = vld [vmem:[#allocation5 + $0x2f4] ss:$8 sps:$4 sm:$0xff]   ;;  %v117_v55 = vld [vmem:[#allocation2 + $0x20] sm:$0xff] }
  0x8d   :  { %1004 = vmatprep.subr.bf16.mxu0 %v1810_v54  ;;  %946 = vmatprep.subr.bf16.mxu1 %v1940_v31  ;;  %v1853_v54 = vld [vmem:[#allocation5 + $0x2f0] ss:$8 sps:$4 sm:$0xff]  }
  0x8f   :  { %947 = vmatpush1.bf16.msra.mxu1 %v1942_v32  ;;  %v1957_v32 = vld [vmem:[#allocation7 + $0x60] sm:$0xff]  }
  0x90   :  { %1005 = vmatpush1.bf16.msra.mxu0 %v1808_v58  ;;  %1649 = vmatprep.subr.bf16.mxu1 %v1949_v36  ;;  %v120_v58 = vld [vmem:[#allocation2 + $0x38] sm:$0xff]  ;;  %v1961_v36 = vld [vmem:[#allocation7 + $0x70] sm:$0xff]  }
  0x91   :  { %1006 = vmatprep.subr.bf16.mxu0 %v1813_v60  ;;  %v133_v60 = vpack.c.bf16 %v125_v56, %v117_v55 }
  0x92   :  { %949 = vmatmul.mubr.bf16.vlgmr.msra.gmra.mrb[0].mxu1 %v129_v40  ;;  %v2108_v40 = vmov 0.0  }
  0x93   :  { %1650 = vmatpush3.bf16.msra.mxu1 %v1950_v38  ;;  %v1963_v38 = vld [vmem:[#allocation7 + $0x78] sm:$0xff]  }
  0x94   :  { %1007 = vmatpush1.bf16.msra.mxu0 %v1811_v62  ;;  %1651 = vmatprep.subr.bf16.mxu1 %v1951_v41  ;;  %v136_v62 = vpack.c.bf16 %v128_v59, %v120_v58 }
  0x95   :  { %1008 = vmatprep.subr.bf16.mxu0 %v1816_v0  ;;  %v1865_v0 = vld [vmem:[#allocation5 + $0x310] ss:$8 sps:$4 sm:$0xff]  }
  0x97   :  { %1652 = vmatpush3.bf16.msra.mxu1 %v1952_v43 }
  0x98   :  { %1009 = vmatpush1.bf16.msra.mxu0 %v1814_v2  ;;  %1653 = vmatprep.subr.bf16.mxu1 %v1953_v45  ;;  %v1871_v2 = vld [vmem:[#allocation5 + $0x320] ss:$8 sps:$4 sm:$0xff]   ;;  %v266_v45 = vlaneseq }
  0x99   :  { %1010 = vmatprep.subr.bf16.mxu0 %v1819_v4  ;;  %v1877_v4 = vld [vmem:[#allocation5 + $0x330] ss:$8 sps:$4 sm:$0xff]  }
  0x9b   :  { %1654 = vmatpush3.bf16.msra.mxu1 %v1954_v47 }
  0x9c   :  { %1011 = vmatpush1.bf16.msra.mxu0 %v1817_v6  ;;  %1655 = vmatprep.subr.bf16.mxu1 %v1955_v49  ;;  %v1883_v6 = vld [vmem:[#allocation5 + $0x340] ss:$8 sps:$4 sm:$0xff]  }
  0x9d   :  { %1012 = vmatprep.subr.bf16.mxu0 %v1822_v8  ;;  %v1889_v8 = vld [vmem:[#allocation5 + $0x350] ss:$8 sps:$4 sm:$0xff]  }
  0x9f   :  { %1656 = vmatpush3.bf16.msra.mxu1 %v1956_v51 }
  0xa0   :  { %1013 = vmatpush1.bf16.msra.mxu0 %v1820_v10  ;;  %v1895_v10 = vld [vmem:[#allocation5 + $0x360] ss:$8 sps:$4 sm:$0xff]   ;;  %1657 = vmatprep.subr.bf16.mxu1 %v1957_v32  ;;  %v1979_v32 = vld [vmem:[#allocation8 + $0x64] ss:$8 sps:$4 sm:$0xff]  }
  0xa1   :  { %1014 = vmatprep.subr.bf16.mxu0 %v1825_v12  ;;  %v1901_v12 = vld [vmem:[#allocation5 + $0x370] ss:$8 sps:$4 sm:$0xff]  }
  0xa3   :  { %1658 = vmatpush3.bf16.msra.mxu1 %v1958_v33  ;;  %v1980_v33 = vld [vmem:[#allocation8 + $0x74] ss:$8 sps:$4 sm:$0xff]  }
  0xa4   :  { %1015 = vmatpush1.bf16.msra.mxu0 %v1823_v15  ;;  %v1915_v15 = vld [vmem:[#allocation5 + $0x394] ss:$8 sps:$4 sm:$0xff]   ;;  %1659 = vmatprep.subr.bf16.mxu1 %v1959_v34  ;;  %v1631_v34 = vld [vmem:[%s2246_s4 + $0x3] ss:$0 sm:$0xff] }
  0xa5   :  { %1016 = vmatprep.subr.bf16.mxu0 %v1828_v18  ;;  %v1919_v18 = vld [vmem:[#allocation5 + $0x3a0] ss:$8 sps:$4 sm:$0xff]  }
  0xa8   :  { %1017 = vmatpush1.bf16.msra.mxu0 %v1826_v20  ;;  %v1925_v20 = vld [vmem:[#allocation5 + $0x3b0] ss:$8 sps:$4 sm:$0xff]  }
  0xa9   :  { %1018 = vmatprep.subr.bf16.mxu0 %v1831_v23  ;;  %v1939_v23 = vld [vmem:[#allocation5 + $0x3d4] ss:$8 sps:$4 sm:$0xff]  }
  0xac   :  { %1019 = vmatpush1.bf16.msra.mxu0 %v1829_v24  ;;  %v1937_v24 = vld [vmem:[#allocation5 + $0x3d0] ss:$8 sps:$4 sm:$0xff]  }
  0xad   :  { %1020 = vmatprep.subr.bf16.mxu0 %v1834_v27  ;;  %v1948_v27 = vld [vmem:[#allocation5 + $0x3f4] ss:$8 sps:$4 sm:$0xff]  }
  0xb0   :  { %1021 = vmatpush1.bf16.msra.mxu0 %v1832_v28  ;;  %v1946_v28 = vld [vmem:[#allocation5 + $0x3f0] ss:$8 sps:$4 sm:$0xff]  }
  0xb1   :  { %1022 = vmatprep.subr.bf16.mxu0 %v1837_v29  ;;  %v119_v29 = vld [vmem:[#allocation2 + $0x30] sm:$0xff] }
  0xb2   :  { %v135_v31 = vpack.c.bf16 %v127_v30, %v119_v29  ;;  %v1976_v29 = vld [vmem:[#allocation8 + $0x34] ss:$8 sps:$4 sm:$0xff]   ;;  %v1977_v30 = vld [vmem:[#allocation8 + $0x44] ss:$8 sps:$4 sm:$0xff]  }
  0xb4   :  { %1023 = vmatpush1.bf16.msra.mxu0 %v1835_v35  ;;  %v1960_v35 = vld [vmem:[#allocation7 + $0x28] sm:$0xff]  }
  0xb5   :  { %1024 = vmatprep.subr.bf16.mxu0 %v1840_v37  ;;  %1660 = vmatpush3.bf16.msra.mxu1 %v1960_v35  ;;  %v1962_v37 = vld [vmem:[#allocation7 + $0x30] sm:$0xff]  }
  0xb6   :  { %1661 = vmatprep.subr.bf16.mxu1 %v1961_v36 }
  0xb8   :  { %1025 = vmatpush1.bf16.msra.mxu0 %v1838_v39  ;;  %v1964_v39 = vld [vmem:[#allocation7 + $0x38] sm:$0xff]  }
  0xb9   :  { %1026 = vmatprep.subr.bf16.mxu0 %v1843_v42  ;;  %1662 = vmatpush3.bf16.msra.mxu1 %v1962_v37 }
  0xba   :  { %1663 = vmatprep.subr.bf16.mxu1 %v1963_v38 }
  0xbc   :  { %1027 = vmatpush1.bf16.msra.mxu0 %v1841_v44 }
  0xbd   :  { %1028 = vmatprep.subr.bf16.mxu0 %v1846_v46  ;;  %1664 = vmatpush3.bf16.msra.mxu1 %v1964_v39  ;;  %v267_v46 = vshrl.u32 %v266_v45, 7 }
  0xbe   :  { %1689 = vmatprep.subr.bf16.mxu1 %v2108_v40 }
  0xbf   :  { %v268_v47 = vsub.s32 0, %v267_v46  ;;  %v272_v49 = vsub.s32 1, %v267_v46 }
  0xc0   :  { %1029 = vmatpush1.bf16.msra.mxu0 %v1844_v48  ;;  %v77_v48 = vld [vmem:[%s2246_s4] sm:$0x3] }
  0xc1   :  { %1030 = vmatprep.subr.bf16.mxu0 %v1849_v50  ;;  %v269_v50 = vrot.slane %v77_v48, %v268_v47  ;;  %v273_v51 = vrot.slane %v77_v48, %v272_v49 }
  0xc4   :  { %1031 = vmatpush1.bf16.msra.mxu0 %v1847_v52 }
  0xc5   :  { %1032 = vmatprep.subr.bf16.mxu0 %v1855_v53 }
  0xc8   :  { %1033 = vmatpush1.bf16.msra.mxu0 %v1853_v54 }
  0xc9   :  { %1045 = vmatprep.subr.bf16.mxu0 %v1861_v57 }
  0xcb   :  { %1035 = vmatmul.mubr.bf16.vlgmr.msra.gmra.mrb[0].mxu0 %v133_v60 }
  0xcc   :  { %1046 = vmatpush1.bf16.msra.mxu0 %v1859_v61  ;;  %1077 = vmatprep.mubr.bf16.mxu0 %v136_v62 }
  0xcd   :  { %1047 = vmatprep.subr.bf16.mxu0 %v1867_v63 }
  0xd0   :  { %1048 = vmatpush1.bf16.msra.mxu0 %v1865_v0 }
  0xd1   :  { %1049 = vmatprep.subr.bf16.mxu0 %v1873_v1 }
  0xd4   :  { %1050 = vmatpush1.bf16.msra.mxu0 %v1871_v2 }
  0xd5   :  { %1051 = vmatprep.subr.bf16.mxu0 %v1879_v3 }
  0xd8   :  { %1052 = vmatpush1.bf16.msra.mxu0 %v1877_v4 }
  0xd9   :  { %1053 = vmatprep.subr.bf16.mxu0 %v1885_v5 }
  0xdc   :  { %1054 = vmatpush1.bf16.msra.mxu0 %v1883_v6  ;;  %v1965_v6 = vld [vmem:[#allocation8] ss:$8 sps:$4 sm:$0xff]  }
  0xdd   :  { %1055 = vmatprep.subr.bf16.mxu0 %v1891_v7  ;;  %v1966_v7 = vld [vmem:[#allocation8 + $0x10] ss:$8 sps:$4 sm:$0xff]  }
  0xe0   :  { %1056 = vmatpush1.bf16.msra.mxu0 %v1889_v8  ;;  %v1967_v8 = vld [vmem:[#allocation8 + $0x20] ss:$8 sps:$4 sm:$0xff]  }
  0xe1   :  { %1057 = vmatprep.subr.bf16.mxu0 %v1897_v9  ;;  %v1968_v9 = vld [vmem:[#allocation8 + $0x30] ss:$8 sps:$4 sm:$0xff]  }
  0xe4   :  { %1058 = vmatpush1.bf16.msra.mxu0 %v1895_v10  ;;  %v1969_v10 = vld [vmem:[#allocation8 + $0x40] ss:$8 sps:$4 sm:$0xff]  }
  0xe5   :  { %1059 = vmatprep.subr.bf16.mxu0 %v1903_v11  ;;  %v1970_v11 = vld [vmem:[#allocation8 + $0x50] ss:$8 sps:$4 sm:$0xff]  }
  0xe8   :  { %1060 = vmatpush1.bf16.msra.mxu0 %v1901_v12  ;;  %v1971_v12 = vld [vmem:[#allocation8 + $0x60] ss:$8 sps:$4 sm:$0xff]  }
  0xe9   :  { %1061 = vmatprep.subr.bf16.mxu0 %v1909_v13  ;;  %v1972_v13 = vld [vmem:[#allocation8 + $0x70] ss:$8 sps:$4 sm:$0xff]  }
  0xec   :  { %1062 = vmatpush1.bf16.msra.mxu0 %v1907_v14 }
  0xed   :  { %1063 = vmatprep.subr.bf16.mxu0 %v1915_v15  ;;  %v1614_v15 = vld [vmem:[%s2246_s4 + $0x2] ss:$0 sm:$0xff] }
  0xf0   :  { %1064 = vmatpush1.bf16.msra.mxu0 %v1913_v16 }
  0xf1   :  { %1065 = vmatprep.subr.bf16.mxu0 %v1921_v17 }
  0xf4   :  { %1066 = vmatpush1.bf16.msra.mxu0 %v1919_v18 }
  0xf5   :  { %1067 = vmatprep.subr.bf16.mxu0 %v1927_v19 }
  0xf8   :  { %1068 = vmatpush1.bf16.msra.mxu0 %v1925_v20 }
  0xf9   :  { %1069 = vmatprep.subr.bf16.mxu0 %v1933_v21 }
  0xfc   :  { %1070 = vmatpush1.bf16.msra.mxu0 %v1931_v22 }
  0xfd   :  { %1071 = vmatprep.subr.bf16.mxu0 %v1939_v23 }
 0x100   :  { %1072 = vmatpush1.bf16.msra.mxu0 %v1937_v24 }
 0x101   :  { %1073 = vmatprep.subr.bf16.mxu0 %v1945_v25  ;;  %v1973_v25 = vld [vmem:[#allocation8 + $0x4] ss:$8 sps:$4 sm:$0xff]  }
 0x104   :  { %1074 = vmatpush1.bf16.msra.mxu0 %v1943_v26 }
 0x105   :  { %1075 = vmatprep.subr.bf16.mxu0 %v1948_v27  ;;  %v1974_v27 = vld [vmem:[#allocation8 + $0x14] ss:$8 sps:$4 sm:$0xff]  }
 0x108   :  { %1076 = vmatpush1.bf16.msra.mxu0 %v1946_v28  ;;  %v1975_v28 = vld [vmem:[#allocation8 + $0x24] ss:$8 sps:$4 sm:$0xff]  }
 0x10b   :  { %1078 = vmatmul.mubr.bf16.vlgmr.msra.gmra.mrb[0].mxu0 %v135_v31  ;;  %v1978_v31 = vld [vmem:[#allocation8 + $0x54] ss:$8 sps:$4 sm:$0xff]  }
 0x165   :  { %v950_v41 = vpop.f32.mrb[0].mxu1 }
 0x166   :  { %v952_v42 = vpop.f32.mrb[1].mxu1  ;;  %v951_v52 = vadd.f32 %v950_v41, %v269_v50 }
 0x167   :  { %v954_v43 = vpop.f32.mrb[2].mxu1  ;;  %v953_v53 = vadd.f32 %v952_v42, %v273_v51 }
 0x168   :  { %v956_v44 = vpop.f32.mrb[3].mxu1  ;;  %v955_v55 = vadd.f32 %v954_v43, %v269_v50 }
 0x169   :  { %v957_v58 = vadd.f32 %v956_v44, %v273_v51 }
 0x1de   :  { %v1079_v54 = vpop.f32.mrb[0].mxu0 }
 0x1df   :  { %v1730_v56 = vadd.f32 %v1079_v54, %v951_v52  ;;  %v1081_v57 = vpop.f32.mrb[1].mxu0 }
 0x1e0   :  { %v1732_v59 = vadd.f32 %v1081_v57, %v953_v53  ;;  %v1083_v60 = vpop.f32.mrb[2].mxu0 }
 0x1e1   :  { %v1734_v61 = vadd.f32 %v1083_v60, %v955_v55  ;;  %v1085_v62 = vpop.f32.mrb[3].mxu0  ;;  %v1088_v0 = vmax.f32 %v1730_v56, 0.0 }
 0x1e2   :  { %v1736_v63 = vadd.f32 %v1085_v62, %v957_v58  ;;  %v1089_v2 = vmax.f32 %v1732_v59, 0.0 }
 0x1e3   :  { %v1090_v1 = vmax.f32 %v1734_v61, 0.0 }
 0x1e4   :  { %v1091_v3 = vmax.f32 %v1736_v63, 0.0 }
 0x1e5   :  { %v1092_v4 = vpack.c.bf16 %v1090_v1, %v1088_v0 }
 0x1e6   :  { %v1093_v5 = vpack.c.bf16 %v1091_v3, %v1089_v2 }
 0x1e8   :  { %1260 = vmatprep.mubr.bf16.mxu1 %v1093_v5 }
 0x1e9   :  { %1261 = vmatmul.mubr.bf16.vlgmr.msra.gmra.mrb[4].mxu1 %v1092_v4 }
 0x1ea   :  { %1690 = vmatpush3.bf16.msra.mxu1 %v1965_v6  ;;  %1705 = vmatprep.mubr.msk.bf16.mxu1 %vm2109_vm0, %v2108_v40 }
 0x1eb   :  { %1691 = vmatprep.subr.bf16.mxu1 %v2108_v40 }
 0x1ee   :  { %1692 = vmatpush3.bf16.msra.mxu1 %v1966_v7 }
 0x1ef   :  { %1693 = vmatprep.subr.bf16.mxu1 %v2108_v40 }
 0x1f2   :  { %1694 = vmatpush3.bf16.msra.mxu1 %v1967_v8 }
 0x1f3   :  { %1695 = vmatprep.subr.bf16.mxu1 %v2108_v40 }
 0x1f6   :  { %1696 = vmatpush3.bf16.msra.mxu1 %v1968_v9 }
 0x1f7   :  { %1697 = vmatprep.subr.bf16.mxu1 %v2108_v40 }
 0x1fa   :  { %1698 = vmatpush3.bf16.msra.mxu1 %v1969_v10 }
 0x1fb   :  { %1699 = vmatprep.subr.bf16.mxu1 %v2108_v40 }
 0x1fe   :  { %1700 = vmatpush3.bf16.msra.mxu1 %v1970_v11 }
 0x1ff   :  { %1701 = vmatprep.subr.bf16.mxu1 %v2108_v40 }
 0x202   :  { %1702 = vmatpush3.bf16.msra.mxu1 %v1971_v12 }
 0x203   :  { %1703 = vmatprep.subr.bf16.mxu1 %v2108_v40 }
 0x206   :  { %1704 = vmatpush3.bf16.msra.mxu1 %v1972_v13 }
 0x207   :  { %1709 = vmatprep.subr.bf16.mxu1 %v2108_v40 }
 0x2bc   :  { %v1665_v14 = vpop.f32.mrb[4].mxu1 }
 0x2bd   :  { %v1666_v16 = vpop.f32.mrb[5].mxu1 }
 0x2be   :  { %v1667_v17 = vadd.f32 %v1666_v16, %v1665_v14  ;;  %v1668_v18 = vpop.f32.mrb[6].mxu1 }
 0x2bf   :  { %v1669_v19 = vpop.f32.mrb[7].mxu1 }
 0x2c0   :  { %v1263_v20 = vadd.f32 %v1667_v17, %v1614_v15  ;;  %v1670_v21 = vadd.f32 %v1669_v19, %v1668_v18 }
 0x2c2   :  { %v1266_v22 = vadd.f32 %v1670_v21, %v1614_v15  ;;  %v1269_v23 = vmax.f32 %v1263_v20, 0.0 }
 0x2c4   :  { %v1270_v24 = vmax.f32 %v1266_v22, 0.0 }
 0x2c6   :  { %v1271_v26 = vpack.c.bf16 %v1270_v24, %v1269_v23 }
 0x2c8   :  { %1706 = vmatmul.mubr.bf16.vlgmr.msra.gmra.mrb[8].mxu1 %v1271_v26 }
 0x2c9   :  { %1710 = vmatpush3.bf16.msra.mxu1 %v1973_v25  ;;  %1725 = vmatprep.mubr.msk.bf16.mxu1 %vm2109_vm0, %v2108_v40 }
 0x2ca   :  { %1711 = vmatprep.subr.bf16.mxu1 %v2108_v40 }
 0x2cd   :  { %1712 = vmatpush3.bf16.msra.mxu1 %v1974_v27 }
 0x2ce   :  { %1713 = vmatprep.subr.bf16.mxu1 %v2108_v40 }
 0x2d1   :  { %1714 = vmatpush3.bf16.msra.mxu1 %v1975_v28 }
 0x2d2   :  { %1715 = vmatprep.subr.bf16.mxu1 %v2108_v40 }
 0x2d5   :  { %1716 = vmatpush3.bf16.msra.mxu1 %v1976_v29 }
 0x2d6   :  { %1717 = vmatprep.subr.bf16.mxu1 %v2108_v40 }
 0x2d9   :  { %1718 = vmatpush3.bf16.msra.mxu1 %v1977_v30 }
 0x2da   :  { %1719 = vmatprep.subr.bf16.mxu1 %v2108_v40 }
 0x2dd   :  { %1720 = vmatpush3.bf16.msra.mxu1 %v1978_v31 }
 0x2de   :  { %1721 = vmatprep.subr.bf16.mxu1 %v2108_v40 }
 0x2e1   :  { %1722 = vmatpush3.bf16.msra.mxu1 %v1979_v32 }
 0x2e2   :  { %1723 = vmatprep.subr.bf16.mxu1 %v2108_v40  ;;  %v1640_v40 = vld [vmem:[%s2246_s4 + $0x4] ss:$0 sm:$0xff] }
 0x2e5   :  { %1724 = vmatpush3.bf16.msra.mxu1 %v1980_v33 }
 0x39b   :  { %v1360_v35 = vpop.f32.mrb[8].mxu1 }
 0x39c   :  { %v1361_v36 = vadd.f32 %v1631_v34, %v1360_v35  ;;  %v1707_v37 = vpop.f32.mrb[9].mxu1 }
 0x39d   :  { %v1363_v38 = vpop.f32.mrb[10].mxu1 }
 0x39e   :  { %v1364_v39 = vadd.f32 %v1631_v34, %v1363_v38  ;;  %v1708_v41 = vpop.f32.mrb[11].mxu1  ;;  %v1367_v42 = vmax.f32 %v1361_v36, 0.0 }
 0x3a0   :  { %v1368_v43 = vmax.f32 %v1364_v39, 0.0 }
 0x3a2   :  { %v1369_v44 = vpack.c.bf16 %v1368_v43, %v1367_v42 }
 0x3a4   :  { %1726 = vmatmul.mubr.bf16.vlgmr.msra.gmra.mrb[12].mxu1 %v1369_v44 }
 0x477   :  { %v1458_v45 = vpop.f32.mrb[12].mxu1 }
 0x478   :  { %v1459_v46 = vadd.f32 %v1640_v40, %v1458_v45  ;;  %v1727_v47 = vpop.f32.mrb[13].mxu1 }
 0x479   :  { %v1461_v48 = vpop.f32.mrb[14].mxu1 }
 0x47a   :  { %1465 = vst [vmem:[#allocation10] sm:$0xff] %v1459_v46  ;;  %v1462_v49 = vadd.f32 %v1640_v40, %v1461_v48  ;;  %v1728_v50 = vpop.f32.mrb[15].mxu1 }
 0x47c   :  { %1466 = vst [vmem:[#allocation10 + $0x8] sm:$0xff] %v1462_v49 }
 0x47d   :  { %2080 = shalt.err (!%p2077_p8)
}
 0x47e   :  { %s2081_s7 = scalar_lea.hbm %s2247_s5, 256 }
 0x47f   :  { %p2082_p9 = scmp.ne.s32.totalorder %s2247_s5, %s2081_s7  ;;  %p2085_p10 = scmp.lt.u32.totalorder %s2081_s7, %s2247_s5 }
 0x481   :  { %p2087_p11 = pnand %p2085_p10, %p2082_p9 }
 0x483   :  { %2090 = shalt.err (!%p2087_p11)
}
 0x484   :  { %1478 = dma.vmem_to_hbm [thread:$0]  %s1473_s27, 256, %s2247_s5, [#allocation4], %s2100_s28, %s2100_s28, %s2101_s29  }
 0x485   :  { %2097 = dma.done.wait [#allocation4], 256  }
 0x486   :  { %2098 = vsyncadd [#allocation4], 4294967040 }
 0x487   :  { %1482 = vsyncpa [#allocation3], 1 }
 0x488   :  { %1483 = vsyncpa [#allocation6], 1 }
 0x489   :  { %1484 = vsyncpa [#allocation9], 1 }
 0x48a   :  { %1485 = vsyncpa [#allocation4], 1 }

</bundles_post_ra>
